<compile_context>
chip_gen: v7x
topology: tpu7x:2x2x1
jax: 0.10.0
libtpu: 0.0.40
codegen_flags: <defaults>
</compile_context>

<pallas_src>
import functools

import jax
import jax.numpy as jnp
from jax import lax
from jax.experimental import pallas as pl
from jax.experimental.pallas import tpu as pltpu


def _round_up(x, m):
    return ((x + m - 1) // m) * m


def _matcher_kernel(d1_ref, d2_ref,
                    row_max_out, row_arg_out, col_arg_out,
                    row_max_acc, row_arg_acc,
                    *, tile_n2, n1, n2, n1p, n2p):
    """One grid step: one tile of desc2 rows against all of desc1.

    d1_ref      : (N1P, DP)     full (padded) desc1, resident every step
    d2_ref      : (TILE, DP)    current tile of (padded) desc2
    row_max_out : (1, N1P) f32  max_j sim[i, j]      (written once, last step)
    row_arg_out : (1, N1P) i32  argmax_j sim[i, j]   == nn12
    col_arg_out : (1, N2P) i32  argmax_i sim[i, j]   == nn21 (block (1, TILE))
    row_max_acc : (1, N1P) f32  VMEM scratch accumulator
    row_arg_acc : (1, N1P) i32  VMEM scratch accumulator
    """
    j = pl.program_id(0)
    last = pl.num_programs(0) - 1

    # sim_t[p, q] = <desc2_tile[p], desc1[q]>  -> (TILE, N1P); f32 MXU accumulate.
    sim = lax.dot_general(
        d2_ref[...], d1_ref[...],
        dimension_numbers=(((1,), (1,)), ((), ())),
        preferred_element_type=jnp.float32,
    )

    d2_idx = lax.broadcasted_iota(jnp.int32, sim.shape, 0) + j * tile_n2  # desc2 id
    d1_idx = lax.broadcasted_iota(jnp.int32, sim.shape, 1)                # desc1 id

    if (n1p != n1) or (n2p != n2):
        # Padded rows/columns must never win a reduction.
        valid = (d2_idx < n2) & (d1_idx < n1)
        sim = jnp.where(valid, sim, -jnp.inf)

    big = jnp.int32(2 ** 30)

    # ---- per-desc1 max / argmax over this desc2 tile (reduce over axis 0) ----
    # Fused: one max reduce + one index min-reduce (first occurrence of the max).
    blk_max = jnp.max(sim, axis=0, keepdims=True)                          # (1, N1P)
    blk_arg = jnp.min(jnp.where(sim == blk_max, d2_idx, big),
                      axis=0, keepdims=True)                               # (1, N1P)

    @pl.when(j == 0)
    def _():
        row_max_acc[...] = blk_max
        row_arg_acc[...] = blk_arg

    @pl.when(j > 0)
    def _():
        # strict '>' keeps the earliest (lowest-index) tile on ties, matching
        # torch.max / first-occurrence argmax semantics.
        better = blk_max > row_max_acc[...]
        row_max_acc[...] = jnp.where(better, blk_max, row_max_acc[...])
        row_arg_acc[...] = jnp.where(better, blk_arg, row_arg_acc[...])

    @pl.when(j == last)
    def _():
        row_max_out[...] = row_max_acc[...]
        row_arg_out[...] = row_arg_acc[...]

    # ---- per-desc2 argmax over all desc1 rows (reduce over axis 1): exact per tile
    col_max = jnp.max(sim, axis=1, keepdims=True)                          # (TILE, 1)
    col_arg = jnp.min(jnp.where(sim == col_max, d1_idx, big), axis=1)      # (TILE,)
    col_arg_out[...] = col_arg.reshape(1, tile_n2)                         # lane-dense


def mutual_nn_match(desc1, desc2, *, tile_n2=256, use_bf16=False):
    """Pallas version of Matcher.forward in 'nnm' mode.

    Returns (matches0, matching_scores0) with the same semantics as the
    PyTorch module:
      matches0[i]         = nn12[i] if i is a mutual nearest neighbour else -1
      matching_scores0[i] = max_j (desc1 @ desc2.T)[i, j]
    """
    n1, d = desc1.shape
    n2, d_b = desc2.shape
    assert d == d_b, "descriptor dims must match"

    # Pad to lane-friendly sizes: D and N1 to multiples of 128 (lane axes of
    # the input / of sim), N2 to a multiple of the column tile.  Zero-padding
    # D does not change similarities; padded rows/cols are masked in-kernel.
    dp = _round_up(d, 128)
    n1p = _round_up(n1, 128)
    tile = _round_up(min(tile_n2, _round_up(n2, 128)), 128)
    n2p = _round_up(n2, tile)
    grid_j = n2p // tile

    in_dtype = jnp.bfloat16 if use_bf16 else jnp.float32
    d1p = jnp.pad(desc1.astype(in_dtype), ((0, n1p - n1), (0, dp - d)))
    d2p = jnp.pad(desc2.astype(in_dtype), ((0, n2p - n2), (0, dp - d)))

    kernel = functools.partial(_matcher_kernel, tile_n2=tile,
                               n1=n1, n2=n2, n1p=n1p, n2p=n2p)

    row_max, row_arg, col_arg = pl.pallas_call(
        kernel,
        out_shape=(
            jax.ShapeDtypeStruct((1, n1p), jnp.float32),   # scores (row max)
            jax.ShapeDtypeStruct((1, n1p), jnp.int32),     # nn12
            jax.ShapeDtypeStruct((1, n2p), jnp.int32),     # nn21
        ),
        grid_spec=pltpu.PrefetchScalarGridSpec(
            num_scalar_prefetch=0,
            grid=(grid_j,),
            in_specs=[
                pl.BlockSpec((n1p, dp), lambda j: (0, 0)),    # desc1 resident
                pl.BlockSpec((tile, dp), lambda j: (j, 0)),   # desc2 column tile
            ],
            out_specs=(
                pl.BlockSpec((1, n1p), lambda j: (0, 0)),     # written at last step
                pl.BlockSpec((1, n1p), lambda j: (0, 0)),
                pl.BlockSpec((1, tile), lambda j: (0, j)),    # lane-dense per-tile
            ),
            scratch_shapes=[
                pltpu.VMEM((1, n1p), jnp.float32),            # row max accumulator
                pltpu.VMEM((1, n1p), jnp.int32),              # row argmax accumulator
            ],
        ),
        compiler_params=pltpu.CompilerParams(
            dimension_semantics=("arbitrary",),               # reduction over tiles
        ),
    )(d1p, d2p)

    nn12 = row_arg[0, :n1]          # (N1,) i32
    nn21 = col_arg[0, :n2]          # (N2,) i32
    scores = row_max[0, :n1]        # (N1,) f32  == topk(sim, k=1)[0].squeeze()

    ids1 = jnp.arange(n1, dtype=jnp.int32)
    mutual = ids1 == nn21[nn12]
    matches0 = jnp.where(mutual, nn12, jnp.int32(-1))
    return matches0, scores


def _reference(desc1, desc2):
    sim = desc1 @ desc2.T
    nn12 = jnp.argmax(sim, axis=1).astype(jnp.int32)
    nn21 = jnp.argmax(sim, axis=0).astype(jnp.int32)
    mutual = jnp.arange(desc1.shape[0]) == nn21[nn12]
    matches = jnp.where(mutual, nn12, jnp.int32(-1))
    scores = jnp.max(sim, axis=1)
    return matches, scores


if __name__ == "__main__":
    key = jax.random.PRNGKey(0)
    k1, k2, k3, k4 = jax.random.split(key, 4)

    def make(k, n, d):
        x = jax.random.normal(k, (n, d), dtype=jnp.float32)
        return x / jnp.linalg.norm(x, axis=1, keepdims=True)   # L2-normalized

    # -- test 1: small, single tile, padded D / N1 / N2 --------------------
    d1a, d2a = make(k1, 64, 32), make(k2, 64, 32)
    m_a, s_a = mutual_nn_match(d1a, d2a)
    jax.block_until_ready((m_a, s_a))
    m_ref, s_ref = _reference(d1a, d2a)
    assert jnp.array_equal(m_a, m_ref), "test1: matches mismatch"
    assert jnp.allclose(s_a, s_ref, atol=1e-5), "test1: scores mismatch"

    # -- test 2: multi-tile reduction + masked padded tail ------------------
    d1b, d2b = make(k3, 96, 32), make(k4, 200, 32)
    m_b, s_b = mutual_nn_match(d1b, d2b, tile_n2=128)   # 2 column tiles, last padded
    jax.block_until_ready((m_b, s_b))
    m_ref, s_ref = _reference(d1b, d2b)
    assert jnp.array_equal(m_b, m_ref), "test2: matches mismatch"
    assert jnp.allclose(s_b, s_ref, atol=1e-5), "test2: scores mismatch"

    print("KERNEL_OK")
</pallas_src>

<mosaic_0001>
module attributes {stable_mosaic.version = 11 : i64} {
  func.func @_matcher_kernel(%arg0: i32, %arg1: memref<128x128xf32, #tpu.memory_space<vmem>>, %arg2: memref<128x128xf32, #tpu.memory_space<vmem>>, %arg3: memref<1x128xf32, #tpu.memory_space<vmem>>, %arg4: memref<1x128xi32, #tpu.memory_space<vmem>>, %arg5: memref<1x128xi32, #tpu.memory_space<vmem>>, %arg6: memref<1x128xf32, #tpu.memory_space<vmem>>, %arg7: memref<1x128xi32, #tpu.memory_space<vmem>>) attributes {dimension_semantics = [#tpu.dimension_semantics<arbitrary>], iteration_bounds = array<i64: 1>, scalar_prefetch = 0 : i64, scratch_operands = 2 : i64, tpu.core_type = #tpu.core_type<tc>, window_params = [{pipeline_mode = #tpu.pipeline_mode<synchronous>, transform_indices = @transform_0, window_bounds = array<i64: 128, 128>}, {transform_indices = @transform_1, window_bounds = array<i64: 128, 128>}, {pipeline_mode = #tpu.pipeline_mode<synchronous>, transform_indices = @transform_2, window_bounds = array<i64: 1, 128>}, {pipeline_mode = #tpu.pipeline_mode<synchronous>, transform_indices = @transform_3, window_bounds = array<i64: 1, 128>}, {transform_indices = @transform_4, window_bounds = array<i64: 1, 128>}]} {
    %c0 = arith.constant 0 : index
    %c0_0 = arith.constant 0 : index
    %0 = vector.load %arg2[%c0, %c0_0] : memref<128x128xf32, #tpu.memory_space<vmem>>, vector<128x128xf32>
    %c0_1 = arith.constant 0 : index
    %c0_2 = arith.constant 0 : index
    %1 = vector.load %arg1[%c0_1, %c0_2] : memref<128x128xf32, #tpu.memory_space<vmem>>, vector<128x128xf32>
    %cst = arith.constant dense<0.000000e+00> : vector<128x128xf32>
    %2 = tpu.matmul %0, %1, %cst {dimension_numbers = #tpu.dot_dimension_numbers<[1], [1], [0], [0], [0, 0, 1, 0], [], []>} : vector<128x128xf32>, vector<128x128xf32>, vector<128x128xf32> -> vector<128x128xf32>
    %3 = tpu.iota {dimensions = array<i32: 0>} : vector<128x128xi32>
    %c128_i32 = arith.constant 128 : i32
    %4 = arith.muli %arg0, %c128_i32 : i32
    %5 = vector.broadcast %4 : i32 to vector<128x128xi32>
    %6 = arith.addi %3, %5 : vector<128x128xi32>
    %7 = tpu.iota {dimensions = array<i32: 1>} : vector<128x128xi32>
    %c64_i32 = arith.constant 64 : i32
    %8 = vector.broadcast %c64_i32 : i32 to vector<128x128xi32>
    %9 = arith.cmpi slt, %6, %8 : vector<128x128xi32>
    %c64_i32_3 = arith.constant 64 : i32
    %10 = vector.broadcast %c64_i32_3 : i32 to vector<128x128xi32>
    %11 = arith.cmpi slt, %7, %10 : vector<128x128xi32>
    %12 = arith.andi %9, %11 : vector<128x128xi1>
    %cst_4 = arith.constant 0xFF800000 : f32
    %13 = vector.broadcast %cst_4 : f32 to vector<128x128xf32>
    %14 = arith.select %12, %2, %13 : vector<128x128xi1>, vector<128x128xf32>
    %cst_5 = arith.constant dense<0xFF800000> : vector<128xf32>
    %15 = vector.multi_reduction <maximumf>, %14, %cst_5 [0] : vector<128x128xf32> to vector<128xf32>
    %16 = vector.shape_cast %15 : vector<128xf32> to vector<1x128xf32>
    %17 = vector.broadcast %16 : vector<1x128xf32> to vector<128x128xf32>
    %18 = arith.cmpf oeq, %14, %17 : vector<128x128xf32>
    %c1073741824_i32 = arith.constant 1073741824 : i32
    %19 = vector.broadcast %c1073741824_i32 : i32 to vector<128x128xi32>
    %20 = arith.select %18, %6, %19 : vector<128x128xi1>, vector<128x128xi32>
    %cst_6 = arith.constant dense<2147483647> : vector<128xi32>
    %21 = vector.multi_reduction <minsi>, %20, %cst_6 [0] : vector<128x128xi32> to vector<128xi32>
    %22 = vector.shape_cast %21 : vector<128xi32> to vector<1x128xi32>
    %c0_i32 = arith.constant 0 : i32
    %23 = arith.cmpi eq, %arg0, %c0_i32 : i32
    %24 = arith.extui %23 : i1 to i32
    %c0_i32_7 = arith.constant 0 : i32
    %25 = arith.cmpi ne, %24, %c0_i32_7 : i32
    scf.if %25 {
      %c0_17 = arith.constant 0 : index
      %c0_18 = arith.constant 0 : index
      %41 = vector.load %arg6[%c0_17, %c0_18] : memref<1x128xf32, #tpu.memory_space<vmem>>, vector<1x128xf32>
      tpu.vector_store %arg6[%c0_17, %c0_18], %16 {strides = array<i32>} : memref<1x128xf32, #tpu.memory_space<vmem>>, vector<1x128xf32>,
      %c0_19 = arith.constant 0 : index
      %c0_20 = arith.constant 0 : index
      %42 = vector.load %arg7[%c0_19, %c0_20] : memref<1x128xi32, #tpu.memory_space<vmem>>, vector<1x128xi32>
      tpu.vector_store %arg7[%c0_19, %c0_20], %22 {strides = array<i32>} : memref<1x128xi32, #tpu.memory_space<vmem>>, vector<1x128xi32>,
    } else {
    }
    %c0_i32_8 = arith.constant 0 : i32
    %26 = arith.cmpi sgt, %arg0, %c0_i32_8 : i32
    %27 = arith.extui %26 : i1 to i32
    %c0_i32_9 = arith.constant 0 : i32
    %28 = arith.cmpi ne, %27, %c0_i32_9 : i32
    scf.if %28 {
      %c0_17 = arith.constant 0 : index
      %c0_18 = arith.constant 0 : index
      %41 = vector.load %arg6[%c0_17, %c0_18] : memref<1x128xf32, #tpu.memory_space<vmem>>, vector<1x128xf32>
      %42 = arith.cmpf ogt, %16, %41 : vector<1x128xf32>
      %c0_19 = arith.constant 0 : index
      %c0_20 = arith.constant 0 : index
      %43 = vector.load %arg6[%c0_19, %c0_20] : memref<1x128xf32, #tpu.memory_space<vmem>>, vector<1x128xf32>
      %44 = arith.select %42, %16, %43 : vector<1x128xi1>, vector<1x128xf32>
      %c0_21 = arith.constant 0 : index
      %c0_22 = arith.constant 0 : index
      %45 = vector.load %arg6[%c0_21, %c0_22] : memref<1x128xf32, #tpu.memory_space<vmem>>, vector<1x128xf32>
      tpu.vector_store %arg6[%c0_21, %c0_22], %44 {strides = array<i32>} : memref<1x128xf32, #tpu.memory_space<vmem>>, vector<1x128xf32>,
      %c0_23 = arith.constant 0 : index
      %c0_24 = arith.constant 0 : index
      %46 = vector.load %arg7[%c0_23, %c0_24] : memref<1x128xi32, #tpu.memory_space<vmem>>, vector<1x128xi32>
      %47 = arith.select %42, %22, %46 : vector<1x128xi1>, vector<1x128xi32>
      %c0_25 = arith.constant 0 : index
      %c0_26 = arith.constant 0 : index
      %48 = vector.load %arg7[%c0_25, %c0_26] : memref<1x128xi32, #tpu.memory_space<vmem>>, vector<1x128xi32>
      tpu.vector_store %arg7[%c0_25, %c0_26], %47 {strides = array<i32>} : memref<1x128xi32, #tpu.memory_space<vmem>>, vector<1x128xi32>,
    } else {
    }
    %c0_i32_10 = arith.constant 0 : i32
    %29 = arith.cmpi eq, %arg0, %c0_i32_10 : i32
    %30 = arith.extui %29 : i1 to i32
    %c0_i32_11 = arith.constant 0 : i32
    %31 = arith.cmpi ne, %30, %c0_i32_11 : i32
    scf.if %31 {
      %c0_17 = arith.constant 0 : index
      %c0_18 = arith.constant 0 : index
      %41 = vector.load %arg6[%c0_17, %c0_18] : memref<1x128xf32, #tpu.memory_space<vmem>>, vector<1x128xf32>
      %c0_19 = arith.constant 0 : index
      %c0_20 = arith.constant 0 : index
      %42 = vector.load %arg3[%c0_19, %c0_20] : memref<1x128xf32, #tpu.memory_space<vmem>>, vector<1x128xf32>
      tpu.vector_store %arg3[%c0_19, %c0_20], %41 {strides = array<i32>} : memref<1x128xf32, #tpu.memory_space<vmem>>, vector<1x128xf32>,
      %c0_21 = arith.constant 0 : index
      %c0_22 = arith.constant 0 : index
      %43 = vector.load %arg7[%c0_21, %c0_22] : memref<1x128xi32, #tpu.memory_space<vmem>>, vector<1x128xi32>
      %c0_23 = arith.constant 0 : index
      %c0_24 = arith.constant 0 : index
      %44 = vector.load %arg4[%c0_23, %c0_24] : memref<1x128xi32, #tpu.memory_space<vmem>>, vector<1x128xi32>
      tpu.vector_store %arg4[%c0_23, %c0_24], %43 {strides = array<i32>} : memref<1x128xi32, #tpu.memory_space<vmem>>, vector<1x128xi32>,
    } else {
    }
    %cst_12 = arith.constant dense<0xFF800000> : vector<128xf32>
    %32 = vector.multi_reduction <maximumf>, %14, %cst_12 [1] : vector<128x128xf32> to vector<128xf32>
    %33 = vector.shape_cast %32 : vector<128xf32> to vector<128x1xf32>
    %34 = vector.broadcast %33 : vector<128x1xf32> to vector<128x128xf32>
    %35 = arith.cmpf oeq, %14, %34 : vector<128x128xf32>
    %c1073741824_i32_13 = arith.constant 1073741824 : i32
    %36 = vector.broadcast %c1073741824_i32_13 : i32 to vector<128x128xi32>
    %37 = arith.select %35, %7, %36 : vector<128x128xi1>, vector<128x128xi32>
    %cst_14 = arith.constant dense<2147483647> : vector<128xi32>
    %38 = vector.multi_reduction <minsi>, %37, %cst_14 [1] : vector<128x128xi32> to vector<128xi32>
    %39 = vector.shape_cast %38 : vector<128xi32> to vector<1x128xi32>
    %c0_15 = arith.constant 0 : index
    %c0_16 = arith.constant 0 : index
    %40 = vector.load %arg5[%c0_15, %c0_16] : memref<1x128xi32, #tpu.memory_space<vmem>>, vector<1x128xi32>
    tpu.vector_store %arg5[%c0_15, %c0_16], %39 {strides = array<i32>} : memref<1x128xi32, #tpu.memory_space<vmem>>, vector<1x128xi32>,
    return
  }
  func.func @transform_0(%arg0: i32) -> (i32, i32) {
    %c0_i32 = arith.constant 0 : i32
    %c0_i32_0 = arith.constant 0 : i32
    %c0_i32_1 = arith.constant 0 : i32
    return %c0_i32, %c0_i32_0 : i32, i32
  }
  func.func @transform_1(%arg0: i32) -> (i32, i32) {
    %c0_i32 = arith.constant 0 : i32
    %c0_i32_0 = arith.constant 0 : i32
    return %arg0, %c0_i32 : i32, i32
  }
  func.func @transform_2(%arg0: i32) -> (i32, i32) {
    %c0_i32 = arith.constant 0 : i32
    %c0_i32_0 = arith.constant 0 : i32
    %c0_i32_1 = arith.constant 0 : i32
    return %c0_i32, %c0_i32_0 : i32, i32
  }
  func.func @transform_3(%arg0: i32) -> (i32, i32) {
    %c0_i32 = arith.constant 0 : i32
    %c0_i32_0 = arith.constant 0 : i32
    %c0_i32_1 = arith.constant 0 : i32
    return %c0_i32, %c0_i32_0 : i32, i32
  }
  func.func @transform_4(%arg0: i32) -> (i32, i32) {
    %c0_i32 = arith.constant 0 : i32
    %c0_i32_0 = arith.constant 0 : i32
    return %c0_i32, %arg0 : i32, i32
  }
}

</mosaic_0001>

<bundles_post_ra>
// kernel: tpu_custom_call.1
= control target key start
LH: loop header
LB: loop body
LE: loop exit
PB: predicated region body
PF: predicated region fallthrough
CT: control target
= control target key end

     0   :  { %10 = vsyncpa [#allocation5], 0  ;;  %s1638_s0 = inlined_call_operand.hbm [shape: f32[128,128], index: 0, kind: input, shape index: {}]   ;;  %s1639_s1 = inlined_call_operand.hbm [shape: f32[128,128], index: 1, kind: input, shape index: {}]   ;;  %s1640_s2 = inlined_call_operand.hbm [shape: f32[1,128], index: 2, kind: output, shape index: {0}]   ;;  %s1641_s3 = inlined_call_operand.hbm [shape: s32[1,128], index: 3, kind: output, shape index: {1}]   ;;  %s1642_s4 = inlined_call_operand.hbm [shape: s32[1,128], index: 4, kind: output, shape index: {2}]  }
   0x1   :  { %11 = vsyncpa [#allocation8], 0 }
   0x2   :  { %12 = vsyncpa [#allocation6], 0 }
   0x3   :  { %13 = vsyncpa [#allocation11], 0  ;;  %s1142_s15 = smov [#allocation4]   ;;  %s1024_s19 = scalar_lea.hbm %s1638_s0, 2048 }
   0x4   :  { %s19_s16 = sshll.u32 %s1142_s15, 4  ;;  %p1025_p0 = scmp.ne.s32.totalorder %s1638_s0, %s1024_s19  ;;  %s20_s16 = int_to_ptr.vmem [resolvable:$true] %s19_s16 }
   0x5   :  { %p1028_p1 = scmp.lt.u32.totalorder %s1024_s19, %s1638_s0 }
   0x7   :  { %p1030_p2 = pnand %p1028_p1, %p1025_p0 }
   0x9   :  { %1033 = shalt.err (!%p1030_p2)
}
   0xa   :  { %s1034_s24 = scalar_lea.vmem %s20_s16, 2048  ;;  %p1039_p4 = scmp.lt.s32.totalorder %s20_s16, %s20_s16 }
   0xb   :  { %p1035_p3 = scmp.ne.s32.totalorder %s20_s16, %s1034_s24  ;;  %p1040_p5 = scmp.lt.s32.totalorder %s1034_s24, %s1034_s24 }
   0xd   :  { %p1041_p6 = por %p1040_p5, %p1039_p4 }
   0xf   :  { %p1042_p7 = pnand %p1041_p6, %p1035_p3 }
  0x11   :  { %1045 = shalt.err (!%p1042_p7)
}
  0x12   :  { %s1143_s25 = smov 128   ;;  %s1144_s26 = smov 8  }
  0x13   :  { %25 = dma.hbm_to_vmem [thread:$0]  %s1638_s0, 2048, %s20_s16, [#allocation5], %s1143_s25, %s1143_s25, %s1144_s26  }
  0x14   :  { %s1145_s29 = smov [#allocation7]   ;;  %s1046_s7 = scalar_lea.hbm %s1639_s1, 2048 }
  0x15   :  { %s31_s30 = sshll.u32 %s1145_s29, 4  ;;  %p1047_p8 = scmp.ne.s32.totalorder %s1639_s1, %s1046_s7  ;;  %s32_s30 = int_to_ptr.vmem [resolvable:$true] %s31_s30 }
  0x16   :  { %p1050_p9 = scmp.lt.u32.totalorder %s1046_s7, %s1639_s1 }
  0x18   :  { %p1052_p10 = pnand %p1050_p9, %p1047_p8 }
  0x1a   :  { %1055 = shalt.err (!%p1052_p10)
}
  0x1b   :  { %s1056_s12 = scalar_lea.vmem %s32_s30, 2048  ;;  %p1061_p12 = scmp.lt.s32.totalorder %s32_s30, %s32_s30 }
  0x1c   :  { %p1057_p11 = scmp.ne.s32.totalorder %s32_s30, %s1056_s12  ;;  %p1062_p13 = scmp.lt.s32.totalorder %s1056_s12, %s1056_s12 }
  0x1e   :  { %p1063_p0 = por %p1062_p13, %p1061_p12 }
  0x20   :  { %p1064_p1 = pnand %p1063_p0, %p1057_p11 }
  0x22   :  { %1067 = shalt.err (!%p1064_p1)
}
  0x23   :  { %37 = dma.hbm_to_vmem [thread:$0]  %s1639_s1, 2048, %s32_s30, [#allocation8], %s1143_s25, %s1143_s25, %s1144_s26  }
  0x24   :  { %1134 = dma.done.wait [#allocation5], 2048  }
  0x25   :  { %1135 = vsyncadd [#allocation5], 4294965248 }
  0x26   :  { %1136 = dma.done.wait [#allocation8], 2048  }
  0x27   :  { %1137 = vsyncadd [#allocation8], 4294965248  ;;  %v1146_v0 = vmov -inf   ;;  %v60_v1 = vld [vmem:[#allocation4] sm:$0xff]  ;;  %v61_v2 = vld [vmem:[#allocation4 + $0x8] sm:$0xff]  ;;  %v221_v33 = vlaneseq  ;;  %s1147_s1 = smov [#allocation10]  }
  0x28   :  { %439 = vmax.xlane.f32.xlu0 %v1146_v0  ;;  %441 = vmax.xlane.f32.xlu1 %v1146_v0  ;;  %v62_v3 = vld [vmem:[#allocation4 + $0x10] sm:$0xff]  ;;  %v968_v4 = vpack.c.bf16 %v61_v2, %v60_v1  ;;  %v63_v5 = vld [vmem:[#allocation4 + $0x18] sm:$0xff]  ;;  %v44_v7 = vld [vmem:[#allocation7] sm:$0xff]  ;;  %s837_s14 = sshll.u32 %s1147_s1, 4  ;;  %s1148_s15 = smov [#allocation9]   ;;  %s838_s14 = int_to_ptr.vmem [resolvable:$true] %s837_s14 }
  0x29   :  { %v972_v6 = vpack.c.bf16 %v63_v5, %v62_v3  ;;  %v64_v8 = vld [vmem:[#allocation4 + $0x20] sm:$0xff]  ;;  %v65_v9 = vld [vmem:[#allocation4 + $0x28] sm:$0xff]  ;;  %944 = vmatprep.mubr.f32.mxu0 %v44_v7  ;;  %v66_v11 = vld [vmem:[#allocation4 + $0x30] sm:$0xff]  ;;  %v1203_v34 = vand.u32 127, %v221_v33  ;;  %s827_s16 = sshll.u32 %s1148_s15, 4  ;;  %s1068_s17 = scalar_lea.vmem %s838_s14, 16  ;;  %s828_s16 = int_to_ptr.vmem [resolvable:$true] %s827_s16 }
  0x2a   :  { %969 = vmatprep.subr.bf16.mxu0 %v968_v4  ;;  %1000 = vmatprep.subr.bf16.mxu1 %v968_v4  ;;  %v976_v10 = vpack.c.bf16 %v65_v9, %v64_v8  ;;  %v67_v12 = vld [vmem:[#allocation4 + $0x38] sm:$0xff]  ;;  %v68_v14 = vld [vmem:[#allocation4 + $0x40] sm:$0xff]  ;;  %v69_v15 = vld [vmem:[#allocation4 + $0x48] sm:$0xff]  ;;  %v1274_v9 = vshrl.u32 %v221_v33, 7  ;;  %p1069_p2 = scmp.ne.s32.totalorder %s838_s14, %s1068_s17  ;;  %s1072_s18 = scalar_lea.vmem %s838_s14, 32 }
  0x2b   :  { %971 = vmatpush3.bf16.xpose.msra.mxu0 %v968_v4  ;;  %1008 = vmatpush3.bf16.xpose.msra.mxu1 %v968_v4  ;;  %v980_v13 = vpack.c.bf16 %v67_v12, %v66_v11  ;;  %v984_v16 = vpack.c.bf16 %v69_v15, %v68_v14  ;;  %v70_v17 = vld [vmem:[#allocation4 + $0x50] sm:$0xff]  ;;  %v71_v18 = vld [vmem:[#allocation4 + $0x58] sm:$0xff]  ;;  %v72_v20 = vld [vmem:[#allocation4 + $0x60] sm:$0xff]  ;;  %vm274_vm0 = vcmp.lt.s32.totalorder %v1203_v34, 64  ;;  %p1073_p3 = scmp.lt.s32.totalorder %s838_s14, %s838_s14  ;;  %p1074_p4 = scmp.lt.s32.totalorder %s1072_s18, %s1068_s17 }
  0x2c   :  { %443 = vmax.xlane.f32.xlu0 %v1146_v0  ;;  %445 = vmax.xlane.f32.xlu1 %v1146_v0  ;;  %v988_v19 = vpack.c.bf16 %v71_v18, %v70_v17  ;;  %v73_v21 = vld [vmem:[#allocation4 + $0x68] sm:$0xff]  ;;  %v74_v23 = vld [vmem:[#allocation4 + $0x70] sm:$0xff]  ;;  %v75_v24 = vld [vmem:[#allocation4 + $0x78] sm:$0xff]  ;;  %v223_v15 = vadd.s32 8, %v1274_v9  ;;  %v225_v17 = vadd.s32 24, %v1274_v9  ;;  %v226_v18 = vadd.s32 32, %v1274_v9 }
  0x2d   :  { %973 = vmatprep.subr.bf16.mxu0 %v972_v6  ;;  %1001 = vmatprep.subr.bf16.mxu1 %v972_v6  ;;  %v992_v22 = vpack.c.bf16 %v73_v21, %v72_v20  ;;  %v996_v25 = vpack.c.bf16 %v75_v24, %v74_v23  ;;  %v45_v26 = vld [vmem:[#allocation7 + $0x8] sm:$0xff]  ;;  %v46_v27 = vld [vmem:[#allocation7 + $0x10] sm:$0xff]  ;;  %v47_v28 = vld [vmem:[#allocation7 + $0x18] sm:$0xff]  ;;  %v228_v20 = vadd.s32 48, %v1274_v9  ;;  %v229_v21 = vadd.s32 56, %v1274_v9  ;;  %p1075_p5 = por %p1074_p4, %p1073_p3 }
  0x2e   :  { %v48_v29 = vld [vmem:[#allocation7 + $0x20] sm:$0xff]  ;;  %v49_v30 = vld [vmem:[#allocation7 + $0x28] sm:$0xff]  ;;  %v50_v31 = vld [vmem:[#allocation7 + $0x30] sm:$0xff]  ;;  %v231_v24 = vadd.s32 72, %v1274_v9 }
  0x2f   :  { %v51_v32 = vld [vmem:[#allocation7 + $0x38] sm:$0xff]  ;;  %p1076_p6 = pnand %p1075_p5, %p1069_p2 }
  0x33   :  { %975 = vmatpush3.bf16.xpose.msra.mxu0 %v972_v6  ;;  %1009 = vmatpush3.bf16.xpose.msra.mxu1 %v972_v6 }
  0x34   :  { %977 = vmatprep.subr.bf16.mxu0 %v976_v10  ;;  %1002 = vmatprep.subr.bf16.mxu1 %v976_v10 }
  0x3b   :  { %979 = vmatpush3.bf16.xpose.msra.mxu0 %v976_v10  ;;  %1010 = vmatpush3.bf16.xpose.msra.mxu1 %v976_v10 }
  0x3c   :  { %981 = vmatprep.subr.bf16.mxu0 %v980_v13  ;;  %1003 = vmatprep.subr.bf16.mxu1 %v980_v13 }
  0x43   :  { %983 = vmatpush3.bf16.xpose.msra.mxu0 %v980_v13  ;;  %1011 = vmatpush3.bf16.xpose.msra.mxu1 %v980_v13 }
  0x44   :  { %985 = vmatprep.subr.bf16.mxu0 %v984_v16  ;;  %1004 = vmatprep.subr.bf16.mxu1 %v984_v16 }
  0x4b   :  { %987 = vmatpush3.bf16.xpose.msra.mxu0 %v984_v16  ;;  %1012 = vmatpush3.bf16.xpose.msra.mxu1 %v984_v16  ;;  %v224_v16 = vadd.s32 16, %v1274_v9 }
  0x4c   :  { %989 = vmatprep.subr.bf16.mxu0 %v988_v19  ;;  %1005 = vmatprep.subr.bf16.mxu1 %v988_v19 }
  0x53   :  { %991 = vmatpush3.bf16.xpose.msra.mxu0 %v988_v19  ;;  %1013 = vmatpush3.bf16.xpose.msra.mxu1 %v988_v19  ;;  %v227_v19 = vadd.s32 40, %v1274_v9 }
  0x54   :  { %993 = vmatprep.subr.bf16.mxu0 %v992_v22  ;;  %1006 = vmatprep.subr.bf16.mxu1 %v992_v22 }
  0x5b   :  { %995 = vmatpush3.bf16.xpose.msra.mxu0 %v992_v22  ;;  %1014 = vmatpush3.bf16.xpose.msra.mxu1 %v992_v22  ;;  %v230_v22 = vadd.s32 64, %v1274_v9 }
  0x5c   :  { %997 = vmatprep.subr.bf16.mxu0 %v996_v25  ;;  %1007 = vmatprep.subr.bf16.mxu1 %v996_v25 }
  0x63   :  { %999 = vmatpush3.bf16.xpose.msra.mxu0 %v996_v25  ;;  %1015 = vmatpush3.bf16.xpose.msra.mxu1 %v996_v25  ;;  %v232_v25 = vadd.s32 80, %v1274_v9 }
  0x6a   :  { %945 = vmatmul.mubr.f32.vlgmr.msra.gmra.mrb[0].mxu0 %v45_v26  ;;  %v233_v26 = vadd.s32 88, %v1274_v9 }
  0x6b   :  { %947 = vmatprep.mubr.f32.mxu0 %v46_v27 }
  0x6e   :  { %948 = vmatmul.mubr.f32.gmra.mrb[2].mxu0 %v47_v28  ;;  %v234_v28 = vadd.s32 96, %v1274_v9 }
  0x6f   :  { %950 = vmatprep.mubr.f32.mxu0 %v48_v29  ;;  %v235_v29 = vadd.s32 104, %v1274_v9 }
  0x72   :  { %951 = vmatmul.mubr.f32.gmra.mrb[4].mxu0 %v49_v30  ;;  %v236_v30 = vadd.s32 112, %v1274_v9 }
  0x73   :  { %953 = vmatprep.mubr.f32.mxu0 %v50_v31  ;;  %v237_v31 = vadd.s32 120, %v1274_v9 }
  0x76   :  { %954 = vmatmul.mubr.f32.gmra.mrb[6].mxu0 %v51_v32 }
  0xb5   :  { %v440_v43 = vpop.xlane.xlu0 %439  ;;  %v442_v48 = vpop.xlane.xlu1 %441 }
  0xb6   :  { %vm872_vm1 = vcmp.eq.f32.partialorder %v440_v43, -inf  ;;  %vm873_vm2 = vcmp.eq.f32.partialorder %v442_v48, -inf }
  0xb7   :  { %v1254_v58 = vsel %vm872_vm1, %v1203_v34, 1073741824  ;;  %v1259_v63 = vsel %vm873_vm2, %v1203_v34, 1073741824 }
  0xb8   :  { %v600_v1 = vshra.s32 %v1254_v58, 16  ;;  %v614_v4 = vshra.s32 %v1259_v63, 16 }
  0xb9   :  { %v444_v56 = vpop.xlane.xlu0 %443  ;;  %v446_v61 = vpop.xlane.xlu1 %445 }
  0xba   :  { %vm874_vm3 = vcmp.eq.f32.partialorder %v444_v56, -inf  ;;  %vm875_vm4 = vcmp.eq.f32.partialorder %v446_v61, -inf  ;;  %v1271_v7 = vcvt.s32.f32 %v600_v1  ;;  %v1277_v11 = vcvt.s32.f32 %v614_v4 }
  0xbb   :  { %v1263_v2 = vsel %vm874_vm3, %v1203_v34, 1073741824  ;;  %v1269_v6 = vsel %vm875_vm4, %v1203_v34, 1073741824 }
  0xbc   :  { %v628_v8 = vshra.s32 %v1263_v2, 16  ;;  %v642_v12 = vshra.s32 %v1269_v6, 16 }
  0xbe   :  { %v1281_v14 = vcvt.s32.f32 %v628_v8  ;;  %v1292_v23 = vcvt.s32.f32 %v642_v12 }
 0x13d   :  { %v946_v35 = vpop.f32.mrb[0].mxu0 }
 0x13e   :  { %v1208_v36 = vsel %vm274_vm0, %v946_v35, -inf  ;;  %v142_v37 = vpop.f32.mrb[1].mxu0 }
 0x13f   :  { %425 = vmax.xlane.f32.xlu0 %v1208_v36  ;;  %v1213_v39 = vsel %vm274_vm0, %v142_v37, -inf }
 0x141   :  { %v949_v38 = vpop.f32.mrb[2].mxu0 }
 0x142   :  { %v1217_v40 = vsel %vm274_vm0, %v949_v38, -inf  ;;  %v152_v41 = vpop.f32.mrb[3].mxu0 }
 0x143   :  { %423 = vmax.xlane.f32.xlu0 %v1213_v39  ;;  %429 = vmax.xlane.f32.xlu1 %v1217_v40  ;;  %v1223_v44 = vsel %vm274_vm0, %v152_v41, -inf }
 0x145   :  { %v952_v42 = vpop.f32.mrb[4].mxu0 }
 0x146   :  { %v162_v45 = vpop.f32.mrb[5].mxu0  ;;  %v1227_v46 = vsel %vm274_vm0, %v952_v42, -inf }
 0x147   :  { %v1231_v47 = vsel %vm274_vm0, %v162_v45, -inf  ;;  %427 = vmax.xlane.f32.xlu1 %v1223_v44  ;;  %v308_v50 = vmax.f32 %v1208_v36, %v1227_v46 }
 0x148   :  { %431 = vmax.xlane.f32.xlu0 %v1231_v47  ;;  %v307_v51 = vmax.f32 %v1213_v39, %v1231_v47 }
 0x149   :  { %v955_v49 = vpop.f32.mrb[6].mxu0 }
 0x14a   :  { %v1241_v52 = vsel %vm274_vm0, %v955_v49, -inf  ;;  %v172_v53 = vpop.f32.mrb[7].mxu0  ;;  %v319_v59 = vmax.f32 %v307_v51, %v308_v50 }
 0x14b   :  { %v310_v54 = vmax.f32 %v1217_v40, %v1241_v52  ;;  %v1247_v55 = vsel %vm274_vm0, %v172_v53, -inf  ;;  %433 = vmax.xlane.f32.xlu1 %v1227_v46 }
 0x14c   :  { %v309_v57 = vmax.f32 %v1223_v44, %v1247_v55  ;;  %435 = vmax.xlane.f32.xlu0 %v1247_v55 }
 0x14e   :  { %v320_v60 = vmax.f32 %v309_v57, %v310_v54 }
 0x14f   :  { %437 = vmax.xlane.f32.xlu1 %v1241_v52 }
 0x150   :  { %v321_v62 = vmax.f32 %v319_v59, %v320_v60  ;;  %447 = vmax.xlane.f32.xlu0 %v1146_v0 }
 0x152   :  { %v322_v3 = vrot.slane %v321_v62, 4 }
 0x153   :  { %449 = vmax.xlane.f32.xlu1 %v1146_v0 }
 0x154   :  { %v323_v5 = vmax.f32 %v321_v62, %v322_v3  ;;  %451 = vmax.xlane.f32.xlu0 %v1146_v0 }
 0x156   :  { %v324_v10 = vrot.slane %v323_v5, 2 }
 0x157   :  { %453 = vmax.xlane.f32.xlu1 %v1146_v0 }
 0x158   :  { %v325_v13 = vmax.f32 %v323_v5, %v324_v10  ;;  %603 = vmin.xlane.f32.xlu0 %v1271_v7 }
 0x15a   :  { %v326_v0 = vrot.slane %v325_v13, 1 }
 0x15b   :  { %617 = vmin.xlane.f32.xlu1 %v1277_v11 }
 0x15c   :  { %v327_v27 = vmax.f32 %v325_v13, %v326_v0  ;;  %631 = vmin.xlane.f32.xlu0 %v1281_v14 }
 0x15e   :  { %vm328_vm5 = vcmp.eq.f32.partialorder %v1213_v39, %v327_v27  ;;  %vm329_vm6 = vcmp.eq.f32.partialorder %v1208_v36, %v327_v27  ;;  %vm330_vm7 = vcmp.eq.f32.partialorder %v1223_v44, %v327_v27  ;;  %vm331_vm8 = vcmp.eq.f32.partialorder %v1217_v40, %v327_v27  ;;  %403 = vst [vmem:[#allocation2] sm:$0x1] %v327_v27 }
 0x15f   :  { %vm332_vm9 = vcmp.eq.f32.partialorder %v1231_v47, %v327_v27  ;;  %vm333_vm10 = vcmp.eq.f32.partialorder %v1227_v46, %v327_v27  ;;  %vm334_vm11 = vcmp.eq.f32.partialorder %v1247_v55, %v327_v27  ;;  %vm335_vm12 = vcmp.eq.f32.partialorder %v1241_v52, %v327_v27  ;;  %645 = vmin.xlane.f32.xlu1 %v1292_v23 }
 0x160   :  { %vm864_vm13 = vcmp.eq.f32.partialorder %v327_v27, -inf  ;;  %v344_v32 = vsel %vm328_vm5, %v1274_v9, 1073741824  ;;  %v345_v33 = vsel %vm329_vm6, %v223_v15, 1073741824  ;;  %v346_v35 = vsel %vm330_vm7, %v224_v16, 1073741824  ;;  %v56_v27 = vld [vmem:[#allocation7 + $0x60] sm:$0xff] }
 0x161   :  { %v347_v37 = vsel %vm331_vm8, %v225_v17, 1073741824  ;;  %v348_v38 = vsel %vm332_vm9, %v226_v18, 1073741824  ;;  %v349_v41 = vsel %vm333_vm10, %v227_v19, 1073741824  ;;  %v350_v42 = vsel %vm334_vm11, %v228_v20, 1073741824  ;;  %v52_v20 = vld [vmem:[#allocation7 + $0x40] sm:$0xff] }
 0x162   :  { %v351_v43 = vsel %vm335_vm12, %v229_v21, 1073741824  ;;  %v352_v45 = vsel %vm864_vm13, %v230_v22, 1073741824  ;;  %v353_v48 = vsel %vm864_vm13, %v231_v24, 1073741824  ;;  %v354_v49 = vsel %vm864_vm13, %v232_v25, 1073741824  ;;  %v53_v21 = vld [vmem:[#allocation7 + $0x48] sm:$0xff]  ;;  %v54_v22 = vld [vmem:[#allocation7 + $0x50] sm:$0xff]  ;;  %956 = vmatprep.mubr.f32.mxu1 %v52_v20 }
 0x163   :  { %v355_v50 = vsel %vm864_vm13, %v233_v26, 1073741824  ;;  %v356_v51 = vsel %vm864_vm13, %v234_v28, 1073741824  ;;  %v357_v53 = vsel %vm864_vm13, %v235_v29, 1073741824  ;;  %v358_v54 = vsel %vm864_vm13, %v236_v30, 1073741824  ;;  %957 = vmatmul.mubr.f32.vlgmr.msra.gmra.mrb[0].mxu1 %v53_v21  ;;  %v55_v25 = vld [vmem:[#allocation7 + $0x58] sm:$0xff]  ;;  %v57_v29 = vld [vmem:[#allocation7 + $0x68] sm:$0xff] }
 0x164   :  { %v359_v56 = vsel %vm864_vm13, %v237_v31, 1073741824  ;;  %vm360_vm14 = vcmp.lt.s32.totalorder %v344_v32, %v348_v38  ;;  %vm362_vm15 = vcmp.lt.s32.totalorder %v345_v33, %v349_v41  ;;  %vm364_vm0 = vcmp.lt.s32.totalorder %v346_v35, %v350_v42  ;;  %959 = vmatprep.mubr.f32.mxu1 %v54_v22  ;;  %v58_v30 = vld [vmem:[#allocation7 + $0x70] sm:$0xff]  ;;  %v59_v31 = vld [vmem:[#allocation7 + $0x78] sm:$0xff] }
 0x165   :  { %v361_v57 = vsel %vm360_vm14, %v344_v32, %v348_v38  ;;  %v363_v59 = vsel %vm362_vm15, %v345_v33, %v349_v41  ;;  %v365_v60 = vsel %vm364_vm0, %v346_v35, %v350_v42  ;;  %vm366_vm1 = vcmp.lt.s32.totalorder %v347_v37, %v351_v43  ;;  %v419_v61 = vld [vmem:[#allocation2] sm:$0x1] }
 0x166   :  { %v367_v62 = vsel %vm366_vm1, %v347_v37, %v351_v43  ;;  %vm368_vm2 = vcmp.lt.s32.totalorder %v361_v57, %v352_v45  ;;  %vm370_vm3 = vcmp.lt.s32.totalorder %v363_v59, %v353_v48  ;;  %vm372_vm4 = vcmp.lt.s32.totalorder %v365_v60, %v354_v49  ;;  %420 = vst [vmem:[#allocation9] sm:$0x1] %v419_v61 }
 0x167   :  { %v369_v1 = vsel %vm368_vm2, %v361_v57, %v352_v45  ;;  %v371_v3 = vsel %vm370_vm3, %v363_v59, %v353_v48  ;;  %v373_v4 = vsel %vm372_vm4, %v365_v60, %v354_v49  ;;  %vm374_vm5 = vcmp.lt.s32.totalorder %v367_v62, %v355_v50  ;;  %960 = vmatmul.mubr.f32.gmra.mrb[2].mxu1 %v55_v25 }
 0x168   :  { %v375_v5 = vsel %vm374_vm5, %v367_v62, %v355_v50  ;;  %vm376_vm6 = vcmp.lt.s32.totalorder %v369_v1, %v356_v51  ;;  %vm378_vm7 = vcmp.lt.s32.totalorder %v371_v3, %v357_v53  ;;  %vm380_vm8 = vcmp.lt.s32.totalorder %v373_v4, %v358_v54  ;;  %962 = vmatprep.mubr.f32.mxu1 %v56_v27 }
 0x169   :  { %v377_v8 = vsel %vm376_vm6, %v369_v1, %v356_v51  ;;  %v379_v10 = vsel %vm378_vm7, %v371_v3, %v357_v53  ;;  %v381_v12 = vsel %vm380_vm8, %v373_v4, %v358_v54  ;;  %vm382_vm9 = vcmp.lt.s32.totalorder %v375_v5, %v359_v56 }
 0x16a   :  { %v383_v13 = vsel %vm382_vm9, %v375_v5, %v359_v56  ;;  %vm384_vm10 = vcmp.lt.s32.totalorder %v377_v8, %v379_v10  ;;  %v599_v27 = vand.u32 65535, %v1254_v58  ;;  %v641_v58 = vand.u32 65535, %v1269_v6 }
 0x16b   :  { %v385_v15 = vsel %vm384_vm10, %v377_v8, %v379_v10  ;;  %vm386_vm11 = vcmp.lt.s32.totalorder %v381_v12, %v383_v13  ;;  %963 = vmatmul.mubr.f32.gmra.mrb[4].mxu1 %v57_v29 }
 0x16c   :  { %v387_v16 = vsel %vm386_vm11, %v381_v12, %v383_v13  ;;  %965 = vmatprep.mubr.f32.mxu1 %v58_v30 }
 0x16d   :  { %vm388_vm12 = vcmp.lt.s32.totalorder %v385_v15, %v387_v16 }
 0x16e   :  { %v389_v17 = vsel %vm388_vm12, %v385_v15, %v387_v16 }
 0x16f   :  { %v390_v18 = vrot.slane %v389_v17, 4  ;;  %966 = vmatmul.mubr.f32.gmra.mrb[6].mxu1 %v59_v31  ;;  %v627_v31 = vand.u32 65535, %v1263_v2 }
 0x171   :  { %vm391_vm13 = vcmp.lt.s32.totalorder %v389_v17, %v390_v18  ;;  %v629_v2 = vcvt.s32.f32 %v627_v31 }
 0x172   :  { %v392_v19 = vsel %vm391_vm13, %v389_v17, %v390_v18 }
 0x173   :  { %v393_v0 = vrot.slane %v392_v19, 2 }
 0x175   :  { %vm394_vm14 = vcmp.lt.s32.totalorder %v392_v19, %v393_v0 }
 0x176   :  { %v395_v24 = vsel %vm394_vm14, %v392_v19, %v393_v0 }
 0x177   :  { %v396_v26 = vrot.slane %v395_v24, 1 }
 0x179   :  { %vm397_vm15 = vcmp.lt.s32.totalorder %v395_v24, %v396_v26 }
 0x17a   :  { %v398_v28 = vsel %vm397_vm15, %v395_v24, %v396_v26 }
 0x17b   :  { %404 = vst [vmem:[#allocation3] sm:$0x1] %v398_v28  ;;  %v613_v28 = vand.u32 65535, %v1259_v63 }
 0x182   :  { %v421_v32 = vld [vmem:[#allocation3] sm:$0x1] }
 0x183   :  { %422 = vst [vmem:[#allocation10] sm:$0x1] %v421_v32 }
 0x1cc   :  { %v426_v33 = vpop.xlane.xlu0 %425 }
 0x1cd   :  { %vm456_vm0 = vcmp.eq.f32.partialorder %v1208_v36, %v426_v33  ;;  %v615_v33 = vcvt.s32.f32 %v613_v28 }
 0x1ce   :  { %v1322_v35 = vsel %vm456_vm0, %v1203_v34, 1073741824 }
 0x1cf   :  { %v502_v37 = vshra.s32 %v1322_v35, 16 }
 0x1d0   :  { %v424_v38 = vpop.xlane.xlu0 %423  ;;  %v430_v41 = vpop.xlane.xlu1 %429 }
 0x1d1   :  { %vm455_vm1 = vcmp.eq.f32.partialorder %v1213_v39, %v424_v38  ;;  %vm458_vm2 = vcmp.eq.f32.partialorder %v1217_v40, %v430_v41  ;;  %v1327_v42 = vcvt.s32.f32 %v502_v37  ;;  %v601_v37 = vcvt.s32.f32 %v599_v27 }
 0x1d2   :  { %v1330_v43 = vsel %vm455_vm1, %v1203_v34, 1073741824  ;;  %v1333_v45 = vsel %vm458_vm2, %v1203_v34, 1073741824 }
 0x1d3   :  { %505 = vmin.xlane.f32.xlu1 %v1327_v42  ;;  %v530_v36 = vshra.s32 %v1333_v45, 16  ;;  %v488_v48 = vshra.s32 %v1330_v43, 16 }
 0x1d4   :  { %v428_v49 = vpop.xlane.xlu1 %427 }
 0x1d5   :  { %vm457_vm3 = vcmp.eq.f32.partialorder %v1223_v44, %v428_v49  ;;  %v432_v39 = vpop.xlane.xlu0 %431  ;;  %v1339_v50 = vcvt.s32.f32 %v530_v36  ;;  %v1341_v40 = vcvt.s32.f32 %v488_v48 }
 0x1d6   :  { %v1344_v51 = vsel %vm457_vm3, %v1203_v34, 1073741824  ;;  %vm459_vm4 = vcmp.eq.f32.partialorder %v1231_v47, %v432_v39 }
 0x1d7   :  { %v1348_v53 = vsel %vm459_vm4, %v1203_v34, 1073741824  ;;  %533 = vmin.xlane.f32.xlu1 %v1339_v50  ;;  %491 = vmin.xlane.f32.xlu0 %v1341_v40  ;;  %v516_v54 = vshra.s32 %v1344_v51, 16 }
 0x1d8   :  { %v434_v44 = vpop.xlane.xlu1 %433  ;;  %v544_v59 = vshra.s32 %v1348_v53, 16 }
 0x1d9   :  { %vm460_vm5 = vcmp.eq.f32.partialorder %v1227_v46, %v434_v44  ;;  %v436_v56 = vpop.xlane.xlu0 %435  ;;  %v1354_v57 = vcvt.s32.f32 %v516_v54 }
 0x1da   :  { %v1358_v60 = vsel %vm460_vm5, %v1203_v34, 1073741824  ;;  %vm461_vm6 = vcmp.eq.f32.partialorder %v1247_v55, %v436_v56  ;;  %v1369_v3 = vcvt.s32.f32 %v544_v59 }
 0x1db   :  { %v1362_v47 = vsel %vm461_vm6, %v1203_v34, 1073741824  ;;  %519 = vmin.xlane.f32.xlu0 %v1354_v57  ;;  %v558_v61 = vshra.s32 %v1358_v60, 16 }
 0x1dc   :  { %v438_v62 = vpop.xlane.xlu1 %437  ;;  %v572_v4 = vshra.s32 %v1362_v47, 16 }
 0x1dd   :  { %vm462_vm7 = vcmp.eq.f32.partialorder %v1241_v52, %v438_v62  ;;  %v448_v46 = vpop.xlane.xlu0 %447  ;;  %v1367_v1 = vcvt.s32.f32 %v558_v61  ;;  %v501_v61 = vand.u32 65535, %v1322_v35 }
 0x1de   :  { %v1373_v5 = vsel %vm462_vm7, %v1203_v34, 1073741824  ;;  %vm876_vm8 = vcmp.eq.f32.partialorder %v448_v46, -inf  ;;  %v1384_v15 = vcvt.s32.f32 %v572_v4 }
 0x1df   :  { %v1376_v55 = vsel %vm876_vm8, %v1203_v34, 1073741824  ;;  %561 = vmin.xlane.f32.xlu1 %v1367_v1  ;;  %547 = vmin.xlane.f32.xlu0 %v1369_v3  ;;  %v586_v52 = vshra.s32 %v1373_v5, 16  ;;  %v503_v46 = vcvt.s32.f32 %v501_v61 }
 0x1e0   :  { %v450_v8 = vpop.xlane.xlu1 %449  ;;  %v656_v10 = vshra.s32 %v1376_v55, 16 }
 0x1e1   :  { %vm877_vm9 = vcmp.eq.f32.partialorder %v450_v8, -inf  ;;  %v452_v12 = vpop.xlane.xlu0 %451  ;;  %v1382_v13 = vcvt.s32.f32 %v586_v52  ;;  %v515_v52 = vand.u32 65535, %v1344_v51  ;;  %v557_v51 = vand.u32 65535, %v1358_v60 }
 0x1e2   :  { %v1387_v16 = vsel %vm877_vm9, %v1203_v34, 1073741824  ;;  %vm878_vm10 = vcmp.eq.f32.partialorder %v452_v12, -inf  ;;  %v1395_v19 = vcvt.s32.f32 %v656_v10 }
 0x1e3   :  { %v1390_v17 = vsel %vm878_vm10, %v1203_v34, 1073741824  ;;  %589 = vmin.xlane.f32.xlu1 %v1382_v13  ;;  %575 = vmin.xlane.f32.xlu0 %v1384_v15  ;;  %v670_v18 = vshra.s32 %v1387_v16, 16  ;;  %v559_v28 = vcvt.s32.f32 %v557_v51 }
 0x1e4   :  { %v454_v0 = vpop.xlane.xlu1 %453  ;;  %v684_v20 = vshra.s32 %v1390_v17, 16 }
 0x1e5   :  { %vm879_vm11 = vcmp.eq.f32.partialorder %v454_v0, -inf  ;;  %v1398_v21 = vcvt.s32.f32 %v670_v18  ;;  %v1403_v24 = vpop.xlane.xlu0 %603  ;;  %v517_v0 = vcvt.s32.f32 %v515_v52 }
 0x1e6   :  { %v1401_v22 = vsel %vm879_vm11, %v1203_v34, 1073741824  ;;  %v1408_v26 = vcvt.s32.f32 %v684_v20  ;;  %vm605_vm13 = vcmp.eq.f32.partialorder %v1271_v7, %v1403_v24  ;;  %v643_v7 = vcvt.s32.f32 %v641_v58 }
 0x1e7   :  { %673 = vmin.xlane.f32.xlu1 %v1398_v21  ;;  %659 = vmin.xlane.f32.xlu0 %v1395_v19  ;;  %v698_v25 = vshra.s32 %v1401_v22, 16  ;;  %v606_v41 = vsel %vm605_vm13, %v601_v37, inf }
 0x1e8   :  { %v1412_v29 = vpop.xlane.xlu1 %617 }
 0x1e9   :  { %v1414_v30 = vcvt.s32.f32 %v698_v25  ;;  %vm619_vm12 = vcmp.eq.f32.partialorder %v1277_v11, %v1412_v29  ;;  %v1424_v32 = vpop.xlane.xlu0 %631 }
 0x1ea   :  { %v620_v38 = vsel %vm619_vm12, %v615_v33, inf  ;;  %vm633_vm15 = vcmp.eq.f32.partialorder %v1281_v14, %v1424_v32  ;;  %v529_v14 = vand.u32 65535, %v1333_v45 }
 0x1eb   :  { %701 = vmin.xlane.f32.xlu1 %v1414_v30  ;;  %687 = vmin.xlane.f32.xlu0 %v1408_v26  ;;  %v634_v6 = vsel %vm633_vm15, %v629_v2, inf }
 0x1ec   :  { %v1426_v63 = vpop.xlane.xlu1 %645  ;;  %v531_v12 = vcvt.s32.f32 %v529_v14 }
 0x1ed   :  { %vm647_vm14 = vcmp.eq.f32.partialorder %v1292_v23, %v1426_v63  ;;  %v487_v23 = vand.u32 65535, %v1330_v43 }
 0x1ee   :  { %v648_v11 = vsel %vm647_vm14, %v643_v7, inf }
 0x1ef   :  { %621 = vmin.xlane.f32.xlu1 %v620_v38  ;;  %607 = vmin.xlane.f32.xlu0 %v606_v41  ;;  %v489_v35 = vcvt.s32.f32 %v487_v23 }
 0x1f3   :  { %649 = vmin.xlane.f32.xlu1 %v648_v11  ;;  %635 = vmin.xlane.f32.xlu0 %v634_v6 }
 0x236   :  { %v958_v36 = vpop.f32.mrb[0].mxu1 }
 0x237   :  { %v182_v48 = vpop.f32.mrb[1].mxu1 }
 0x23a   :  { %v961_v49 = vpop.f32.mrb[2].mxu1 }
 0x23b   :  { %v192_v39 = vpop.f32.mrb[3].mxu1 }
 0x23e   :  { %v964_v54 = vpop.f32.mrb[4].mxu1 }
 0x23f   :  { %v202_v44 = vpop.f32.mrb[5].mxu1 }
 0x242   :  { %v967_v56 = vpop.f32.mrb[6].mxu1 }
 0x243   :  { %v212_v59 = vpop.f32.mrb[7].mxu1 }
 0x260   :  { %v1435_v62 = vpop.xlane.xlu1 %505 }
 0x261   :  { %vm507_vm0 = vcmp.eq.f32.partialorder %v1327_v42, %v1435_v62  ;;  %v543_v42 = vand.u32 65535, %v1348_v53 }
 0x262   :  { %v508_v4 = vsel %vm507_vm0, %v503_v46, inf }
 0x263   :  { %509 = vmin.xlane.f32.xlu1 %v508_v4  ;;  %v545_v53 = vcvt.s32.f32 %v543_v42 }
 0x264   :  { %v1440_v8 = vpop.xlane.xlu1 %533  ;;  %v1442_v10 = vpop.xlane.xlu0 %491 }
 0x265   :  { %vm535_vm1 = vcmp.eq.f32.partialorder %v1339_v50, %v1440_v8  ;;  %vm493_vm2 = vcmp.eq.f32.partialorder %v1341_v40, %v1442_v10  ;;  %v571_v50 = vand.u32 65535, %v1362_v47  ;;  %v585_v40 = vand.u32 65535, %v1373_v5 }
 0x266   :  { %v536_v43 = vsel %vm535_vm1, %v531_v12, inf  ;;  %v494_v45 = vsel %vm493_vm2, %v489_v35, inf  ;;  %v655_v47 = vand.u32 65535, %v1376_v55  ;;  %v669_v5 = vand.u32 65535, %v1387_v16 }
 0x267   :  { %537 = vmin.xlane.f32.xlu1 %v536_v43  ;;  %495 = vmin.xlane.f32.xlu0 %v494_v45  ;;  %v587_v33 = vcvt.s32.f32 %v585_v40  ;;  %v573_v37 = vcvt.s32.f32 %v571_v50  ;;  %v683_v55 = vand.u32 65535, %v1390_v17  ;;  %v697_v16 = vand.u32 65535, %v1401_v22 }
 0x268   :  { %v1450_v18 = vpop.xlane.xlu0 %519  ;;  %v671_v7 = vcvt.s32.f32 %v669_v5  ;;  %v657_v2 = vcvt.s32.f32 %v655_v47 }
 0x269   :  { %vm521_vm3 = vcmp.eq.f32.partialorder %v1354_v57, %v1450_v18  ;;  %v699_v22 = vcvt.s32.f32 %v697_v16  ;;  %v685_v6 = vcvt.s32.f32 %v683_v55 }
 0x26a   :  { %v522_v20 = vsel %vm521_vm3, %v517_v0, inf }
 0x26b   :  { %523 = vmin.xlane.f32.xlu0 %v522_v20 }
 0x26c   :  { %v1456_v25 = vpop.xlane.xlu1 %561  ;;  %v1458_v27 = vpop.xlane.xlu0 %547 }
 0x26d   :  { %vm563_vm4 = vcmp.eq.f32.partialorder %v1367_v1, %v1456_v25  ;;  %vm549_vm5 = vcmp.eq.f32.partialorder %v1369_v3, %v1458_v27 }
 0x26e   :  { %v564_v60 = vsel %vm563_vm4, %v559_v28, inf  ;;  %v550_v57 = vsel %vm549_vm5, %v545_v53, inf }
 0x26f   :  { %565 = vmin.xlane.f32.xlu1 %v564_v60  ;;  %551 = vmin.xlane.f32.xlu0 %v550_v57 }
 0x270   :  { %v1466_v31 = vpop.xlane.xlu1 %589  ;;  %v1468_v58 = vpop.xlane.xlu0 %575 }
 0x271   :  { %vm591_vm6 = vcmp.eq.f32.partialorder %v1382_v13, %v1466_v31  ;;  %vm577_vm7 = vcmp.eq.f32.partialorder %v1384_v15, %v1468_v58 }
 0x272   :  { %v592_v1 = vsel %vm591_vm6, %v587_v33, inf  ;;  %v578_v3 = vsel %vm577_vm7, %v573_v37, inf }
 0x273   :  { %593 = vmin.xlane.f32.xlu1 %v592_v1  ;;  %579 = vmin.xlane.f32.xlu0 %v578_v3 }
 0x274   :  { %v1476_v38 = vpop.xlane.xlu1 %673  ;;  %v1478_v41 = vpop.xlane.xlu0 %659 }
 0x275   :  { %vm675_vm8 = vcmp.eq.f32.partialorder %v1398_v21, %v1476_v38  ;;  %vm661_vm9 = vcmp.eq.f32.partialorder %v1395_v19, %v1478_v41 }
 0x276   :  { %v676_v13 = vsel %vm675_vm8, %v671_v7, inf  ;;  %v662_v15 = vsel %vm661_vm9, %v657_v2, inf }
 0x277   :  { %677 = vmin.xlane.f32.xlu1 %v676_v13  ;;  %663 = vmin.xlane.f32.xlu0 %v662_v15 }
 0x278   :  { %v1484_v11 = vpop.xlane.xlu1 %701  ;;  %v1486_v17 = vpop.xlane.xlu0 %687 }
 0x279   :  { %vm703_vm10 = vcmp.eq.f32.partialorder %v1414_v30, %v1484_v11  ;;  %vm689_vm11 = vcmp.eq.f32.partialorder %v1408_v26, %v1486_v17 }
 0x27a   :  { %v704_v21 = vsel %vm703_vm10, %v699_v22, inf  ;;  %v690_v36 = vsel %vm689_vm11, %v685_v6, inf }
 0x27b   :  { %705 = vmin.xlane.f32.xlu1 %v704_v21  ;;  %691 = vmin.xlane.f32.xlu0 %v690_v36 }
 0x27c   :  { %1079 = shalt.err (!%p1076_p6)
}
 0x27d   :  { %s1080_s21 = scalar_lea.hbm %s1641_s3, 16 }
 0x27e   :  { %p1081_p7 = scmp.ne.s32.totalorder %s1641_s3, %s1080_s21  ;;  %p1084_p8 = scmp.lt.u32.totalorder %s1080_s21, %s1641_s3 }
 0x280   :  { %p1086_p9 = pnand %p1084_p8, %p1081_p7 }
 0x282   :  { %1089 = shalt.err (!%p1086_p9)
}
 0x283   :  { %840 = dma.vmem_to_hbm [thread:$0]  %s838_s14, 16, %s1641_s3, [#allocation11]  }
 0x284   :  { %s1090_s28 = scalar_lea.vmem %s828_s16, 16  ;;  %s1094_s29 = scalar_lea.vmem %s828_s16, 32 }
 0x285   :  { %p1091_p10 = scmp.ne.s32.totalorder %s828_s16, %s1090_s28  ;;  %p1095_p11 = scmp.lt.s32.totalorder %s828_s16, %s828_s16 }
 0x286   :  { %p1096_p12 = scmp.lt.s32.totalorder %s1094_s29, %s1090_s28 }
 0x288   :  { %p1097_p13 = por %p1096_p12, %p1095_p11 }
 0x28a   :  { %p1098_p0 = pnand %p1097_p13, %p1091_p10 }
 0x28c   :  { %1101 = shalt.err (!%p1098_p0)
}
 0x28d   :  { %s1102_s6 = scalar_lea.hbm %s1640_s2, 16 }
 0x28e   :  { %p1103_p1 = scmp.ne.s32.totalorder %s1640_s2, %s1102_s6  ;;  %p1106_p2 = scmp.lt.u32.totalorder %s1102_s6, %s1640_s2 }
 0x290   :  { %p1108_p3 = pnand %p1106_p2, %p1103_p1 }
 0x292   :  { %1111 = shalt.err (!%p1108_p3)
}
 0x293   :  { %830 = dma.vmem_to_hbm [thread:$0]  %s828_s16, 16, %s1640_s2, [#allocation6]   ;;  %v1516_v19 = vpop.xlane.xlu1 %621  ;;  %v610_v26 = vcvt.f32.s32 %v1403_v24  ;;  %v624_v30 = vcvt.f32.s32 %v1412_v29  ;;  %v1520_v48 = vpop.xlane.xlu0 %607  ;;  %v638_v49 = vcvt.f32.s32 %v1424_v32  ;;  %v652_v39 = vcvt.f32.s32 %v1426_v63 }
 0x294   :  { %v1525_v54 = vadd.s32 4294967224, %v1203_v34  ;;  %v1528_v44 = vadd.s32 4294967232, %v1203_v34  ;;  %v1533_v24 = vadd.s32 4294967208, %v1203_v34  ;;  %v1536_v29 = vadd.s32 4294967216, %v1203_v34  ;;  %s1149_s2 = smov [#allocation12]  }
 0x295   :  { %v611_v59 = vshll.u32 %v610_v26, 16  ;;  %v625_v61 = vshll.u32 %v624_v30, 16  ;;  %v512_v32 = vcvt.f32.s32 %v1435_v62  ;;  %v540_v63 = vcvt.f32.s32 %v1440_v8  ;;  %s847_s12 = sshll.u32 %s1149_s2, 4  ;;  %s848_s12 = int_to_ptr.vmem [resolvable:$true] %s847_s12 }
 0x296   :  { %v498_v23 = vcvt.f32.s32 %v1442_v10  ;;  %v715_v14 = vadd.s32 4294967288, %v1203_v34  ;;  %v1542_v46 = vshll.u32 %v638_v49, 16  ;;  %v1544_v4 = vshll.u32 %v652_v39, 16  ;;  %s1112_s0 = scalar_lea.vmem %s848_s12, 16  ;;  %s1116_s13 = scalar_lea.vmem %s848_s12, 32 }
 0x297   :  { %v1530_v56 = vpop.xlane.xlu1 %649  ;;  %v526_v52 = vcvt.f32.s32 %v1450_v18  ;;  %v568_v12 = vcvt.f32.s32 %v1456_v25  ;;  %v554_v35 = vcvt.f32.s32 %v1458_v27  ;;  %v596_v43 = vcvt.f32.s32 %v1466_v31  ;;  %v1554_v10 = vpop.xlane.xlu0 %635  ;;  %p1113_p4 = scmp.ne.s32.totalorder %s848_s12, %s1112_s0  ;;  %p1117_p5 = scmp.lt.s32.totalorder %s848_s12, %s848_s12 }
 0x298   :  { %v774_v62 = vsub.s32 %v1525_v54, %v1274_v9  ;;  %v767_v8 = vsub.s32 %v1528_v44, %v1274_v9  ;;  %v582_v42 = vcvt.f32.s32 %v1468_v58  ;;  %v788_v51 = vsub.s32 %v1533_v24, %v1274_v9  ;;  %p1118_p6 = scmp.lt.s32.totalorder %s1116_s13, %s1112_s0 }
 0x299   :  { %v781_v18 = vsub.s32 %v1536_v29, %v1274_v9  ;;  %v513_v20 = vshll.u32 %v512_v32, 16  ;;  %v541_v50 = vshll.u32 %v540_v63, 16  ;;  %v499_v40 = vshll.u32 %v498_v23, 16 }
 0x29a   :  { %v718_v25 = vsub.s32 %v715_v14, %v1274_v9  ;;  %v527_v27 = vshll.u32 %v526_v52, 16  ;;  %v569_v28 = vshll.u32 %v568_v12, 16  ;;  %v680_v53 = vcvt.f32.s32 %v1476_v38  ;;  %p1119_p7 = por %p1118_p6, %p1117_p5 }
 0x29b   :  { %v666_v60 = vcvt.f32.s32 %v1478_v41  ;;  %v555_v57 = vshll.u32 %v554_v35, 16  ;;  %v1564_v47 = vshll.u32 %v596_v43, 16  ;;  %v729_v5 = vadd.s32 4294967272, %v1203_v34 }
 0x29c   :  { %v722_v33 = vadd.s32 4294967280, %v1203_v34  ;;  %v1568_v37 = vshll.u32 %v582_v42, 16  ;;  %v713_v3 = vsub.s32 %v1203_v34, %v1274_v9  ;;  %v708_v16 = vcvt.f32.s32 %v1484_v11  ;;  %p1120_p8 = pnand %p1119_p7, %p1113_p4 }
 0x29d   :  { %v694_v38 = vcvt.f32.s32 %v1486_v17  ;;  %v623_v41 = vcvt.f32.s32 %v1516_v19  ;;  %v1575_v2 = vshll.u32 %v680_v53, 16  ;;  %v1577_v13 = vshll.u32 %v666_v60, 16 }
 0x29e   :  { %v609_v15 = vcvt.f32.s32 %v1520_v48  ;;  %v732_v6 = vsub.s32 %v729_v5, %v1274_v9  ;;  %vm720_vm12 = vcmask 130112   ;;  %v725_v21 = vsub.s32 %v722_v33, %v1274_v9 }
 0x29f   :  { %v743_v11 = vadd.s32 4294967256, %v1203_v34  ;;  %v736_v19 = vadd.s32 4294967264, %v1203_v34  ;;  %v1584_v49 = vshll.u32 %v708_v16, 16  ;;  %v1586_v39 = vshll.u32 %v694_v38, 16 }
 0x2a0   :  { %v626_v54 = vadd.s32 %v625_v61, %v623_v41  ;;  %v612_v32 = vadd.s32 %v611_v59, %v609_v15  ;;  %vm727_vm13 = vcmask 195712   ;;  %vm734_vm14 = vcmask 261312  }
 0x2a1   :  { %v746_v14 = vsub.s32 %v743_v11, %v1274_v9  ;;  %v757_v35 = vadd.s32 4294967240, %v1203_v34  ;;  %v750_v43 = vadd.s32 4294967248, %v1203_v34  ;;  %v651_v59 = vcvt.f32.s32 %v1530_v56 }
 0x2a2   :  { %v775_v61 = vrot.slane %v626_v54, %v774_v62  ;;  %vm741_vm15 = vcmask 326912   ;;  %vm748_vm0 = vcmask 392512   ;;  %vm755_vm1 = vcmask 458112  }
 0x2a3   :  { %v760_v5 = vsub.s32 %v757_v35, %v1274_v9  ;;  %v792_v41 = vadd.s32 4294967200, %v1203_v34  ;;  %vm762_vm2 = vcmask 523712   ;;  %v799_v15 = vadd.s32 4294967192, %v1203_v34 }
 0x2a4   :  { %vm769_vm3 = vcmask 589312   ;;  %vm776_vm4 = vcmask 654912   ;;  %vm783_vm5 = vcmask 720512   ;;  %vm790_vm6 = vcmask 786112  }
 0x2a5   :  { %vm797_vm7 = vcmask 851712   ;;  %vm804_vm8 = vcmask 917312   ;;  %vm811_vm9 = vcmask 982912   ;;  %vm818_vm10 = vcmask 1048512  }
 0x2f0   :  { %v510_v45 = vpop.xlane.xlu1 %509 }
 0x2f1   :  { %v511_v0 = vcvt.f32.s32 %v510_v45 }
 0x2f3   :  { %v514_v1 = vadd.s32 %v513_v20, %v511_v0  ;;  %v739_v0 = vsub.s32 %v736_v19, %v1274_v9  ;;  %v802_v19 = vsub.s32 %v799_v15, %v1274_v9 }
 0x2f4   :  { %v538_v31 = vpop.xlane.xlu1 %537  ;;  %v496_v58 = vpop.xlane.xlu0 %495 }
 0x2f5   :  { %v497_v55 = vcvt.f32.s32 %v496_v58  ;;  %v539_v7 = vcvt.f32.s32 %v538_v31  ;;  %v719_v26 = vrot.slane %v514_v1, %v718_v25  ;;  %v753_v58 = vsub.s32 %v750_v43, %v1274_v9 }
 0x2f7   :  { %v500_v22 = vadd.s32 %v499_v40, %v497_v55  ;;  %v542_v48 = vadd.s32 %v541_v50, %v539_v7  ;;  %v637_v50 = vcvt.f32.s32 %v1554_v10  ;;  %v768_v10 = vrot.slane %v612_v32, %v767_v8 }
 0x2f8   :  { %v524_v36 = vpop.xlane.xlu0 %523  ;;  %v813_v8 = vadd.s32 4294967176, %v1203_v34 }
 0x2f9   :  { %v714_v17 = vrot.slane %v500_v22, %v713_v3  ;;  %v525_v30 = vcvt.f32.s32 %v524_v36  ;;  %v733_v40 = vrot.slane %v542_v48, %v732_v6  ;;  %v806_v36 = vadd.s32 4294967184, %v1203_v34 }
 0x2fa   :  { %v816_v34 = vsub.s32 %v813_v8, %v1274_v9 }
 0x2fb   :  { %v721_v63 = vsel %vm720_vm12, %v719_v26, %v714_v17  ;;  %v528_v23 = vadd.s32 %v527_v27, %v525_v30  ;;  %v795_v26 = vsub.s32 %v792_v41, %v1274_v9  ;;  %v809_v32 = vsub.s32 %v806_v36, %v1274_v9 }
 0x2fc   :  { %v566_v52 = vpop.xlane.xlu1 %565  ;;  %v552_v12 = vpop.xlane.xlu0 %551 }
 0x2fd   :  { %v726_v45 = vrot.slane %v528_v23, %v725_v21  ;;  %v567_v42 = vcvt.f32.s32 %v566_v52  ;;  %v553_v20 = vcvt.f32.s32 %v552_v12 }
 0x2ff   :  { %v728_v25 = vsel %vm727_vm13, %v726_v45, %v721_v63  ;;  %v570_v27 = vadd.s32 %v569_v28, %v567_v42  ;;  %v556_v53 = vadd.s32 %v555_v57, %v553_v20  ;;  %v654_v28 = vadd.s32 %v1544_v4, %v651_v59 }
 0x300   :  { %v735_v60 = vsel %vm734_vm14, %v733_v40, %v728_v25  ;;  %v594_v31 = vpop.xlane.xlu1 %593  ;;  %v580_v33 = vpop.xlane.xlu0 %579  ;;  %v640_v57 = vadd.s32 %v1542_v46, %v637_v50 }
 0x301   :  { %v747_v62 = vrot.slane %v570_v27, %v746_v14  ;;  %v740_v1 = vrot.slane %v556_v53, %v739_v0  ;;  %v595_v56 = vcvt.f32.s32 %v594_v31  ;;  %v581_v3 = vcvt.f32.s32 %v580_v33 }
 0x303   :  { %v742_v55 = vsel %vm741_vm15, %v740_v1, %v735_v60  ;;  %v598_v16 = vadd.s32 %v1564_v47, %v595_v56  ;;  %v584_v38 = vadd.s32 %v1568_v37, %v581_v3  ;;  %v789_v47 = vrot.slane %v654_v28, %v788_v51 }
 0x304   :  { %v749_v7 = vsel %vm748_vm0, %v747_v62, %v742_v55  ;;  %v678_v22 = vpop.xlane.xlu1 %677  ;;  %v664_v44 = vpop.xlane.xlu0 %663  ;;  %v782_v37 = vrot.slane %v640_v57, %v781_v18 }
 0x305   :  { %v761_v4 = vrot.slane %v598_v16, %v760_v5  ;;  %v754_v6 = vrot.slane %v584_v38, %v753_v58  ;;  %v679_v46 = vcvt.f32.s32 %v678_v22  ;;  %v665_v21 = vcvt.f32.s32 %v664_v44 }
 0x307   :  { %v756_v11 = vsel %vm755_vm1, %v754_v6, %v749_v7  ;;  %v668_v17 = vadd.s32 %v1577_v13, %v665_v21  ;;  %v682_v24 = vadd.s32 %v1575_v2, %v679_v46 }
 0x308   :  { %v763_v30 = vsel %vm762_vm2, %v761_v4, %v756_v11  ;;  %v706_v51 = vpop.xlane.xlu1 %705  ;;  %v692_v29 = vpop.xlane.xlu0 %691 }
 0x309   :  { %v770_v18 = vsel %vm769_vm3, %v768_v10, %v763_v30  ;;  %v707_v54 = vcvt.f32.s32 %v706_v51  ;;  %v693_v63 = vcvt.f32.s32 %v692_v29  ;;  %v796_v23 = vrot.slane %v668_v17, %v795_v26 }
 0x30a   :  { %v777_v48 = vsel %vm776_vm4, %v775_v61, %v770_v18  ;;  %v803_v52 = vrot.slane %v682_v24, %v802_v19 }
 0x30b   :  { %v784_v13 = vsel %vm783_vm5, %v782_v37, %v777_v48  ;;  %v710_v14 = vadd.s32 %v1584_v49, %v707_v54  ;;  %v696_v12 = vadd.s32 %v1586_v39, %v693_v63 }
 0x30c   :  { %v791_v2 = vsel %vm790_vm6, %v789_v47, %v784_v13 }
 0x30d   :  { %v798_v35 = vsel %vm797_vm7, %v796_v23, %v791_v2  ;;  %v817_v43 = vrot.slane %v710_v14, %v816_v34  ;;  %v810_v45 = vrot.slane %v696_v12, %v809_v32 }
 0x30e   :  { %v805_v42 = vsel %vm804_vm8, %v803_v52, %v798_v35 }
 0x30f   :  { %v812_v0 = vsel %vm811_vm9, %v810_v45, %v805_v42 }
 0x310   :  { %v819_v9 = vsel %vm818_vm10, %v817_v43, %v812_v0 }
 0x311   :  { %820 = vst [vmem:[#allocation12] sm:$0x1] %v819_v9 }
 0x312   :  { %1123 = shalt.err (!%p1120_p8)
}
 0x313   :  { %s1124_s15 = scalar_lea.hbm %s1642_s4, 16 }
 0x314   :  { %p1125_p9 = scmp.ne.s32.totalorder %s1642_s4, %s1124_s15  ;;  %p1128_p10 = scmp.lt.u32.totalorder %s1124_s15, %s1642_s4 }
 0x316   :  { %p1130_p11 = pnand %p1128_p10, %p1125_p9 }
 0x318   :  { %1133 = shalt.err (!%p1130_p11)
}
 0x319   :  { %850 = dma.vmem_to_hbm [thread:$0]  %s848_s12, 16, %s1642_s4, [#allocation11]  }
 0x31a   :  { %1138 = dma.done.wait [#allocation6], 16  }
 0x31b   :  { %1139 = vsyncadd [#allocation6], 4294967280 }
 0x31c   :  { %1140 = dma.done.wait [#allocation11], 32  }
 0x31d   :  { %1141 = vsyncadd [#allocation11], 4294967264 }
 0x31e   :  { %860 = vsyncpa [#allocation5], 1 }
 0x31f   :  { %861 = vsyncpa [#allocation8], 1 }
 0x320   :  { %862 = vsyncpa [#allocation6], 1 }
 0x321   :  { %863 = vsyncpa [#allocation11], 1 }

</bundles_post_ra>
